<compile_context>
chip_gen: v7x
topology: tpu7x:2x2x1
jax: 0.10.0
libtpu: 0.0.40
codegen_flags: <defaults>
</compile_context>

<pallas_src>
import functools

import jax
import jax.numpy as jnp
from jax.experimental import pallas as pl
from jax.experimental.pallas import tpu as pltpu


def _graph_diffusion_kernel(adj_ref, x_ref, invd_ref, w_ref, b_ref, o_ref, slab_ref, *,
                            max_diffusion, in_features, row_tile, adj_resident):
    """Grid = (max_diffusion, num_row_tiles); k (outer) = diffusion power step,
    i (inner) = adjacency row tile.

    adj_ref : (row_tile, N) or (N, N)  bf16  raw adjacency (streamed tile / resident)
    x_ref   : (N, F)                   bf16  node features (state_0), resident
    invd_ref: (row_tile, 1)            f32   1 / rowsum(adj) rows for this tile
    w_ref   : (K*F, O)                 bf16  weight, rows reordered to k*F + f, resident
    b_ref   : (1, O)                   f32   bias, resident
    o_ref   : (row_tile, O)            f32   output rows for this tile
    slab_ref: (N, K*F)                 bf16  scratch; state_k at columns [k*F, (k+1)*F)
    """
    F = in_features
    k_idx = pl.program_id(0)
    i = pl.program_id(1)
    row_start = pl.multiple_of(i * row_tile, row_tile)

    if adj_resident:
        adj_rows = adj_ref[pl.ds(row_start, row_tile), :]     # (row_tile, N) bf16
    else:
        adj_rows = adj_ref[...]                                # (row_tile, N) bf16
    inv_d = invd_ref[...]                                      # (row_tile, 1) f32

    def diffuse(prev_bf16, out_col):
        # One power-iteration step restricted to this row tile:
        #   state_next[rows] = (adj[rows, :] @ prev) * inv_d[rows]   (== D^-1 A prev)
        s = jnp.dot(adj_rows, prev_bf16, preferred_element_type=jnp.float32) * inv_d
        slab_ref[pl.ds(row_start, row_tile), out_col:out_col + F] = s.astype(slab_ref.dtype)

    @pl.when(k_idx == 0)
    def _():
        # state_0 (= x) goes into slab columns [0, F); state_1 into [F, 2F).
        slab_ref[pl.ds(row_start, row_tile), 0:F] = (
            x_ref[pl.ds(row_start, row_tile), :].astype(slab_ref.dtype))
        diffuse(x_ref[...], F)

    # Static unroll over the remaining diffusion steps (max_diffusion is small) so all
    # slab column offsets stay static lane slices.
    for kk in range(1, max_diffusion):
        @pl.when(k_idx == kk)
        def _(kk=kk):
            # state_{kk} for ALL rows was written during the previous k sweep
            # (grid iterates k outermost, sequentially on one TensorCore).
            diffuse(slab_ref[:, kk * F:(kk + 1) * F], (kk + 1) * F)

    @pl.when(k_idx == max_diffusion - 1)
    def _():
        # Fused projection: one contiguous (row_tile, K*F) slab read, ONE MXU matmul.
        states = slab_ref[pl.ds(row_start, row_tile), :]       # (row_tile, K*F) bf16
        acc = jnp.dot(states, w_ref[...], preferred_element_type=jnp.float32)
        o_ref[...] = (acc + b_ref[...]).astype(o_ref.dtype)


def _vmem_budget_bytes():
    """Generation-aware usable-VMEM budget (leaves headroom for compiler scratch)."""
    cap = 64 * 1024 * 1024
    try:
        cap = int(pltpu.get_tpu_info().vmem_capacity_bytes)
    except Exception:
        pass
    # ~3/4 of physical (48 MiB on v7x's 64 MiB), capped at 100 MiB on v5e/v6e (128 MiB).
    return int(min(cap * 3 // 4, 100 * 1024 * 1024))


def _footprint_bytes(N, F, K, O, row_tile, adj_resident):
    bf2, f4 = 2, 4
    adj = 2 * (N * N if adj_resident else row_tile * N) * bf2   # double-buffered bf16
    x = 2 * N * F * bf2
    invd = 2 * row_tile * f4
    w = 2 * K * F * O * bf2
    b = 2 * O * f4
    out = 2 * row_tile * O * f4
    slab = N * K * F * bf2
    return adj + x + invd + w + b + out + slab


def _row_tile_candidates(N):
    cands = [c for c in (1024, 512, 384, 256, 192, 128, 96, 64, 48, 32, 16)
             if c <= N and N % c == 0]
    if N <= 2048 and N not in cands:
        cands.append(N)
    if not cands:
        cands = [N]
    return sorted(set(cands), reverse=True)


def graph_diffusion_forward(x, adj, weight_support, bias_support, max_diffusion,
                            *, row_tile=None, adj_resident=None):
    """Mirrors GraphDiffusion.forward for batch_size == 1, include_reversed=False.

    x:              (N, F) or (1, N, F)
    adj:            (N, N)                       (zero row sums -> inf/nan, as in torch)
    weight_support: ((max_diffusion+1)*F, O)     torch row ordering f*K + k
    bias_support:   (1, O)
    returns:        (1, N, O) float32
    """
    if x.ndim == 3:
        assert x.shape[0] == 1, "torch bmm reshape only supports batch_size == 1"
        x2d = x[0]
    else:
        x2d = x
    N, F = x2d.shape
    K = max_diffusion + 1
    O = weight_support.shape[1]
    assert weight_support.shape[0] == K * F
    assert max_diffusion >= 1

    # One-time wrapper-side glue (outside the hot loop):
    #  * reorder weight rows from torch's f*K+k to k*F+f and cast to bf16
    #  * cast adjacency and features to bf16 (MXU-native; halves HBM traffic)
    #  * precompute the row normalisation 1/rowsum(adj) in f32
    w_bf = jnp.transpose(weight_support.reshape(F, K, O), (1, 0, 2)).reshape(K * F, O)
    w_bf = w_bf.astype(jnp.bfloat16)
    adj_bf = adj.astype(jnp.bfloat16)
    x_bf = x2d.astype(jnp.bfloat16)
    inv_d = (1.0 / jnp.sum(adj, axis=1, keepdims=True)).astype(jnp.float32)
    bias = bias_support.astype(jnp.float32)

    budget = _vmem_budget_bytes()
    cands = _row_tile_candidates(N)

    # Budget-driven config: prefer a fully VMEM-resident adjacency (fetched once
    # instead of max_diffusion times); otherwise stream (row_tile, N) tiles.
    if adj_resident is None:
        adj_resident = _footprint_bytes(N, F, K, O, min(cands), True) <= budget
    if row_tile is None:
        row_tile = None
        for rt in cands:
            if _footprint_bytes(N, F, K, O, rt, adj_resident) <= budget:
                row_tile = rt
                break
        if row_tile is None:
            row_tile = min(cands)
    assert N % row_tile == 0, "row_tile must divide num_nodes"
    assert row_tile % 16 == 0 or row_tile == N, "bf16 tiling needs row_tile % 16 == 0"
    num_tiles = N // row_tile
    last_k = max_diffusion - 1

    kernel = functools.partial(_graph_diffusion_kernel,
                               max_diffusion=max_diffusion, in_features=F,
                               row_tile=row_tile, adj_resident=adj_resident)

    if adj_resident:
        adj_spec = pl.BlockSpec((N, N), lambda k, i: (0, 0))           # resident, 1 fetch
    else:
        adj_spec = pl.BlockSpec((row_tile, N), lambda k, i: (i, 0))    # streamed tiles

    # Output block index only advances on the final k sweep, so no uninitialised
    # blocks are written back to HBM during intermediate diffusion sweeps.
    out_spec = pl.BlockSpec((row_tile, O),
                            lambda k, i: (jnp.where(k == last_k, i, 0), 0))

    adj_hbm_bytes = 2 * N * N * (1 if adj_resident else max_diffusion)
    cost = pl.CostEstimate(
        flops=2 * max_diffusion * N * N * F + 2 * N * (K * F) * O,
        transcendentals=0,
        bytes_accessed=adj_hbm_bytes + 2 * N * F + 4 * N + 2 * K * F * O + 4 * O + 4 * N * O,
    )

    out2d = pl.pallas_call(
        kernel,
        out_shape=jax.ShapeDtypeStruct((N, O), jnp.float32),
        grid_spec=pltpu.PrefetchScalarGridSpec(
            num_scalar_prefetch=0,
            grid=(max_diffusion, num_tiles),          # k outer (sequential dep), rows inner
            in_specs=[
                adj_spec,                                             # adjacency (bf16)
                pl.BlockSpec((N, F), lambda k, i: (0, 0)),            # x (bf16, resident)
                pl.BlockSpec((row_tile, 1), lambda k, i: (i, 0)),     # 1/rowsum (f32)
                pl.BlockSpec((K * F, O), lambda k, i: (0, 0)),        # weight (bf16, resident)
                pl.BlockSpec((1, O), lambda k, i: (0, 0)),            # bias (f32, resident)
            ],
            out_specs=out_spec,
            scratch_shapes=[pltpu.VMEM((N, K * F), jnp.bfloat16)],    # contiguous state slab
        ),
        compiler_params=pltpu.CompilerParams(
            # k must stay sequential; the row axis also stays "arbitrary" because every
            # row tile reads the FULL previous state from the shared slab scratch.
            # TODO(synk): a v7x 2-TensorCore row split needs the slab in VMEM_SHARED/CMEM
            # plus a pltpu.core_barrier after each k sweep.
            dimension_semantics=("arbitrary", "arbitrary"),
            vmem_limit_bytes=budget,
        ),
        cost_estimate=cost,
    )(adj_bf, x_bf, inv_d, w_bf, bias)

    return out2d.reshape(1, N, O)


def _reference_forward(x2d, adj, weight_support, bias_support, max_diffusion):
    """Pure-JAX f32 reference replicating the torch code path (batch_size == 1)."""
    N, F = x2d.shape
    K = max_diffusion + 1
    d = jnp.sum(adj, axis=1, keepdims=True)
    trans = adj / d
    states = [x2d]
    s = x2d
    for _ in range(1, K):
        s = trans @ s
        states.append(s)
    stacked = jnp.stack(states, axis=0)                                # (K, N, F)
    states_flat = jnp.transpose(stacked, (1, 2, 0)).reshape(N, F * K)  # f*K+k column order
    return (states_flat @ weight_support + bias_support).reshape(1, N, -1)


if __name__ == "__main__":
    # Small, deterministic example (batch_size = 1 path of the torch module).
    num_nodes = 32
    in_features = 8
    out_features = 32
    max_diffusion = 2
    K = max_diffusion + 1

    key = jax.random.PRNGKey(0)
    k_x, k_adj, k_w, k_b = jax.random.split(key, 4)

    x = jax.random.normal(k_x, (num_nodes, in_features), dtype=jnp.float32)

    # Adjacency with strictly positive row sums (uniform weights + self loops).
    adj = jax.random.uniform(k_adj, (num_nodes, num_nodes), dtype=jnp.float32)
    adj = adj + jnp.eye(num_nodes, dtype=jnp.float32)

    # Deterministic xavier-uniform-like parameter init (synthetic, not a checkpoint).
    fan_in, fan_out = K * in_features, out_features
    limit_w = (6.0 / (fan_in + fan_out)) ** 0.5
    weight_support = jax.random.uniform(
        k_w, (K * in_features, out_features), dtype=jnp.float32,
        minval=-limit_w, maxval=limit_w)
    limit_b = (6.0 / (1 + out_features)) ** 0.5
    bias_support = jax.random.uniform(
        k_b, (1, out_features), dtype=jnp.float32, minval=-limit_b, maxval=limit_b)

    ref = _reference_forward(x, adj, weight_support, bias_support, max_diffusion)

    # 1) Auto config: adjacency VMEM-resident, budget-driven row tile.
    out_res = graph_diffusion_forward(x, adj, weight_support, bias_support, max_diffusion)
    out_res = jax.block_until_ready(out_res)
    assert out_res.shape == (1, num_nodes, out_features)
    # bf16 MXU inputs / bf16 state slab -> relaxed tolerance vs the f32 reference.
    assert jnp.allclose(out_res, ref, atol=2e-2, rtol=2e-2), "resident path mismatch"

    # 2) Forced streamed/tiled path (row_tile=16 -> grid (2, 2)): exercises the
    #    adjacency row-tile pipeline used when N^2 does not fit VMEM.
    out_str = graph_diffusion_forward(x, adj, weight_support, bias_support, max_diffusion,
                                      row_tile=16, adj_resident=False)
    out_str = jax.block_until_ready(out_str)
    assert jnp.allclose(out_str, ref, atol=2e-2, rtol=2e-2), "streamed path mismatch"

    print("KERNEL_OK")
</pallas_src>

<mosaic_0001>
module attributes {stable_mosaic.version = 11 : i64} {
  func.func @_graph_diffusion_kernel(%arg0: i32, %arg1: i32, %arg2: memref<32x32xbf16, #tpu.memory_space<vmem>>, %arg3: memref<32x8xbf16, #tpu.memory_space<vmem>>, %arg4: memref<32x1xf32, #tpu.memory_space<vmem>>, %arg5: memref<24x32xbf16, #tpu.memory_space<vmem>>, %arg6: memref<1x32xf32, #tpu.memory_space<vmem>>, %arg7: memref<32x32xf32, #tpu.memory_space<vmem>>, %arg8: memref<32x24xbf16, #tpu.memory_space<vmem>>) attributes {dimension_semantics = [#tpu.dimension_semantics<arbitrary>, #tpu.dimension_semantics<arbitrary>], iteration_bounds = array<i64: 2, 1>, scalar_prefetch = 0 : i64, scratch_operands = 1 : i64, tpu.core_type = #tpu.core_type<tc>, window_params = [{pipeline_mode = #tpu.pipeline_mode<synchronous>, transform_indices = @transform_0, window_bounds = array<i64: 32, 32>}, {pipeline_mode = #tpu.pipeline_mode<synchronous>, transform_indices = @transform_1, window_bounds = array<i64: 32, 8>}, {transform_indices = @transform_2, window_bounds = array<i64: 32, 1>}, {pipeline_mode = #tpu.pipeline_mode<synchronous>, transform_indices = @transform_3, window_bounds = array<i64: 24, 32>}, {pipeline_mode = #tpu.pipeline_mode<synchronous>, transform_indices = @transform_4, window_bounds = array<i64: 1, 32>}, {transform_indices = @transform_5, window_bounds = array<i64: 32, 32>}]} {
    %c32_i32 = arith.constant 32 : i32
    %0 = arith.muli %arg1, %c32_i32 : i32
    %1 = tpu.assume_multiple %0, 32 : i32
    %2 = arith.index_cast %1 : i32 to index
    %c0 = arith.constant 0 : index
    %3 = vector.load %arg2[%2, %c0] : memref<32x32xbf16, #tpu.memory_space<vmem>>, vector<32x32xbf16>
    %c0_0 = arith.constant 0 : index
    %c0_1 = arith.constant 0 : index
    %4 = vector.load %arg4[%c0_0, %c0_1] : memref<32x1xf32, #tpu.memory_space<vmem>>, vector<32x1xf32>
    %c0_i32 = arith.constant 0 : i32
    %5 = arith.cmpi eq, %arg0, %c0_i32 : i32
    %6 = arith.extui %5 : i1 to i32
    %c0_i32_2 = arith.constant 0 : i32
    %7 = arith.cmpi ne, %6, %c0_i32_2 : i32
    scf.if %7 {
      %14 = arith.index_cast %1 : i32 to index
      %c0_6 = arith.constant 0 : index
      %15 = vector.load %arg3[%14, %c0_6] : memref<32x8xbf16, #tpu.memory_space<vmem>>, vector<32x8xbf16>
      %16 = arith.index_cast %1 : i32 to index
      %c0_7 = arith.constant 0 : index
      %17 = vector.load %arg8[%16, %c0_7] : memref<32x24xbf16, #tpu.memory_space<vmem>>, vector<32x8xbf16>
      tpu.vector_store %arg8[%16, %c0_7], %15 {strides = array<i32>} : memref<32x24xbf16, #tpu.memory_space<vmem>>, vector<32x8xbf16>,
      %c0_8 = arith.constant 0 : index
      %c0_9 = arith.constant 0 : index
      %18 = vector.load %arg3[%c0_8, %c0_9] : memref<32x8xbf16, #tpu.memory_space<vmem>>, vector<32x8xbf16>
      %cst = arith.constant dense<0.000000e+00> : vector<32x8xf32>
      %19 = tpu.matmul %3, %18, %cst {dimension_numbers = #tpu.dot_dimension_numbers<[1], [0], [0], [1], [0, 0, 1, 1], [], []>} : vector<32x32xbf16>, vector<32x8xbf16>, vector<32x8xf32> -> vector<32x8xf32>
      %20 = vector.broadcast %4 : vector<32x1xf32> to vector<32x8xf32>
      %21 = arith.mulf %19, %20 : vector<32x8xf32>
      %22 = arith.truncf %21 : vector<32x8xf32> to vector<32x8xbf16>
      %23 = arith.index_cast %1 : i32 to index
      %c8 = arith.constant 8 : index
      %24 = vector.load %arg8[%23, %c8] : memref<32x24xbf16, #tpu.memory_space<vmem>>, vector<32x8xbf16>
      tpu.vector_store %arg8[%23, %c8], %22 {strides = array<i32>} : memref<32x24xbf16, #tpu.memory_space<vmem>>, vector<32x8xbf16>,
    } else {
    }
    %c1_i32 = arith.constant 1 : i32
    %8 = arith.cmpi eq, %arg0, %c1_i32 : i32
    %9 = arith.extui %8 : i1 to i32
    %c0_i32_3 = arith.constant 0 : i32
    %10 = arith.cmpi ne, %9, %c0_i32_3 : i32
    scf.if %10 {
      %c0_6 = arith.constant 0 : index
      %c8 = arith.constant 8 : index
      %14 = vector.load %arg8[%c0_6, %c8] : memref<32x24xbf16, #tpu.memory_space<vmem>>, vector<32x8xbf16>
      %cst = arith.constant dense<0.000000e+00> : vector<32x8xf32>
      %15 = tpu.matmul %3, %14, %cst {dimension_numbers = #tpu.dot_dimension_numbers<[1], [0], [0], [1], [0, 0, 1, 1], [], []>} : vector<32x32xbf16>, vector<32x8xbf16>, vector<32x8xf32> -> vector<32x8xf32>
      %16 = vector.broadcast %4 : vector<32x1xf32> to vector<32x8xf32>
      %17 = arith.mulf %15, %16 : vector<32x8xf32>
      %18 = arith.truncf %17 : vector<32x8xf32> to vector<32x8xbf16>
      %19 = arith.index_cast %1 : i32 to index
      %c16 = arith.constant 16 : index
      %20 = vector.load %arg8[%19, %c16] : memref<32x24xbf16, #tpu.memory_space<vmem>>, vector<32x8xbf16>
      tpu.vector_store %arg8[%19, %c16], %18 {strides = array<i32>} : memref<32x24xbf16, #tpu.memory_space<vmem>>, vector<32x8xbf16>,
    } else {
    }
    %c1_i32_4 = arith.constant 1 : i32
    %11 = arith.cmpi eq, %arg0, %c1_i32_4 : i32
    %12 = arith.extui %11 : i1 to i32
    %c0_i32_5 = arith.constant 0 : i32
    %13 = arith.cmpi ne, %12, %c0_i32_5 : i32
    scf.if %13 {
      %14 = arith.index_cast %1 : i32 to index
      %c0_6 = arith.constant 0 : index
      %15 = vector.load %arg8[%14, %c0_6] : memref<32x24xbf16, #tpu.memory_space<vmem>>, vector<32x24xbf16>
      %c0_7 = arith.constant 0 : index
      %c0_8 = arith.constant 0 : index
      %16 = vector.load %arg5[%c0_7, %c0_8] : memref<24x32xbf16, #tpu.memory_space<vmem>>, vector<24x32xbf16>
      %cst = arith.constant dense<0.000000e+00> : vector<32x32xf32>
      %17 = tpu.matmul %15, %16, %cst {dimension_numbers = #tpu.dot_dimension_numbers<[1], [0], [0], [1], [0, 0, 1, 1], [], []>} : vector<32x24xbf16>, vector<24x32xbf16>, vector<32x32xf32> -> vector<32x32xf32>
      %c0_9 = arith.constant 0 : index
      %c0_10 = arith.constant 0 : index
      %18 = vector.load %arg6[%c0_9, %c0_10] : memref<1x32xf32, #tpu.memory_space<vmem>>, vector<1x32xf32>
      %19 = vector.broadcast %18 : vector<1x32xf32> to vector<32x32xf32>
      %20 = arith.addf %17, %19 : vector<32x32xf32>
      %c0_11 = arith.constant 0 : index
      %c0_12 = arith.constant 0 : index
      %21 = vector.load %arg7[%c0_11, %c0_12] : memref<32x32xf32, #tpu.memory_space<vmem>>, vector<32x32xf32>
      tpu.vector_store %arg7[%c0_11, %c0_12], %20 {strides = array<i32>} : memref<32x32xf32, #tpu.memory_space<vmem>>, vector<32x32xf32>,
    } else {
    }
    return
  }
  func.func @transform_0(%arg0: i32, %arg1: i32) -> (i32, i32) {
    %c0_i32 = arith.constant 0 : i32
    %c0_i32_0 = arith.constant 0 : i32
    %c0_i32_1 = arith.constant 0 : i32
    return %c0_i32, %c0_i32_0 : i32, i32
  }
  func.func @transform_1(%arg0: i32, %arg1: i32) -> (i32, i32) {
    %c0_i32 = arith.constant 0 : i32
    %c0_i32_0 = arith.constant 0 : i32
    %c0_i32_1 = arith.constant 0 : i32
    return %c0_i32, %c0_i32_0 : i32, i32
  }
  func.func @transform_2(%arg0: i32, %arg1: i32) -> (i32, i32) {
    %c0_i32 = arith.constant 0 : i32
    %c0_i32_0 = arith.constant 0 : i32
    return %arg1, %c0_i32 : i32, i32
  }
  func.func @transform_3(%arg0: i32, %arg1: i32) -> (i32, i32) {
    %c0_i32 = arith.constant 0 : i32
    %c0_i32_0 = arith.constant 0 : i32
    %c0_i32_1 = arith.constant 0 : i32
    return %c0_i32, %c0_i32_0 : i32, i32
  }
  func.func @transform_4(%arg0: i32, %arg1: i32) -> (i32, i32) {
    %c0_i32 = arith.constant 0 : i32
    %c0_i32_0 = arith.constant 0 : i32
    %c0_i32_1 = arith.constant 0 : i32
    return %c0_i32, %c0_i32_0 : i32, i32
  }
  func.func @transform_5(%arg0: i32, %arg1: i32) -> (i32, i32) {
    %c1_i32 = arith.constant 1 : i32
    %0 = arith.cmpi eq, %arg0, %c1_i32 : i32
    %c0_i32 = arith.constant 0 : i32
    %1 = arith.select %0, %arg1, %c0_i32 : i32
    %c0_i32_0 = arith.constant 0 : i32
    %c0_i32_1 = arith.constant 0 : i32
    return %1, %c0_i32_0 : i32, i32
  }
}

</mosaic_0001>

<bundles_post_ra>
// kernel: tpu_custom_call.1
= control target key start
LH: loop header
LB: loop body
LE: loop exit
PB: predicated region body
PF: predicated region fallthrough
CT: control target
= control target key end

     0   :  { %10 = vsyncpa [#allocation4], 0  ;;  %s1062_s0 = inlined_call_operand.vmem [shape: bf16[32,32], index: 0, kind: input, shape index: {}]   ;;  %s1063_s1 = inlined_call_operand.vmem [shape: bf16[32,8], index: 1, kind: input, shape index: {}]   ;;  %s1064_s2 = inlined_call_operand.vmem [shape: f32[32,1], index: 2, kind: input, shape index: {}]   ;;  %s1065_s3 = inlined_call_operand.vmem [shape: bf16[24,32], index: 3, kind: input, shape index: {}]   ;;  %s1066_s4 = inlined_call_operand.vmem [shape: f32[1,32], index: 4, kind: input, shape index: {}]   ;;  %s1067_s5 = inlined_call_operand.hbm [shape: f32[32,32], index: 5, kind: output, shape index: {}]  }
   0x1   :  { %12 = vsyncpa [#allocation4 + $0x1], 0  ;;  %s919_s18 = smov 0   ;;  %s921_s19 = smov 0  }
   0x2   :  { %s923_s20 = smov 0  }
   0x3 LB: > { %s709_s21 = sadd.s32 4294967295, %s879_s20   ;;  %s710_s22 = sadd.s32 4294967294, %s879_s20   ;;  %s879_s20 = sphi %s923_s20, %s18_s20   ;;  %s875_s19 = sphi %s921_s19, %s1070_s19   ;;  %s871_s18 = sphi %s919_s18, %s1069_s18  }
   0x4   : > { %s30_s23 = sadd.s32 1, %s875_s19  ;;  %p713_p0 = scmp.ge.s32.totalorder %s879_s20, 1 }
   0x5   : > { %p32_p1 = scmp.ge.s32.totalorder %s30_s23, 2  ;;  %p207_p2 = scmp.lt.s32.totalorder %s879_s20, 3 }
   0x7   : > { %s1072_s23 = smov (%p32_p1, %s30_s23), 0  ;;  %p208_p3 = pnand %p713_p0, %p207_p2 }
   0x8   : > { %v944_v0 = vld [vmem:[%s1062_s0] sm:$0xf] (!%p208_p3)  ;;  %v949_v1 = vld [vmem:[%s1062_s0 + $0x4] sm:$0xf] (!%p208_p3)  ;;  %v954_v2 = vld [vmem:[%s1062_s0 + $0x8] sm:$0xf] (!%p208_p3) }
   0x9   : > { %211 = sbr.rel (%p208_p3) target bundleno = 1075 (0x433), region = 40  ;;  %v959_v3 = vld [vmem:[%s1062_s0 + $0xc] sm:$0xf] (!%p208_p3)  ;;  %v964_v4 = vld [vmem:[%s1064_s2] sm:$0xff] (!%p208_p3)  ;;  %v974_v6 = vld [vmem:[%s1064_s2 + $0x10] sm:$0xff] (!%p208_p3)  ;;  %p714_p4 = scmp.ne.s32.totalorder (!%p208_p3), %s871_s18, 0 }
   0xa   : > { %v969_v5 = vld [vmem:[%s1064_s2 + $0x8] sm:$0xff] (!%p208_p3)  ;;  %v979_v7 = vld [vmem:[%s1064_s2 + $0x18] sm:$0xff] (!%p208_p3) }
  0x10   : > { %261 = sbr.rel (%p714_p4) target bundleno = 360 (0x168), region = 44  ;;  %v819_v8 = vld [vmem:[%s1063_s1] sm:$0xff] (!%p714_p4)   ;;  %v717_v9 = vcombine.low (!%p714_p4), %v944_v0, %v949_v1  ;;  %vm313_vm0 = vcmask (!%p714_p4), 261120   ;;  %v820_v10 = vld [vmem:[%s1063_s1 + $0x8] sm:$0xff] (!%p714_p4)   ;;  %v881_v11 = vmov (!%p714_p4), 0   ;;  %v718_v12 = vcombine.low (!%p714_p4), %v954_v2, %v959_v3  ;;  %s882_s29 = smov (!%p714_p4), 8  }
  0x11   : > { %749 = vmatprep.subr.bf16.mxu0 (!%p714_p4), %v819_v8  ;;  %818 = vset.pattern.permute.xlu1 (!%p714_p4), %v881_v11  ;;  %v821_v13 = vld [vmem:[%s1063_s1 + $0x8] sm:$0xff] (!%p714_p4)   ;;  %vm284_vm1 = vcmask (!%p714_p4), 64512   ;;  %v822_v14 = vld [vmem:[%s1063_s1] sm:$0xff] (!%p714_p4)   ;;  %vm403_vm2 = vcmask (!%p714_p4), 130112  }
  0x12   : > { %753 = vmatprep.mubr.msk.bf16.mxu0 (!%p714_p4), %vm313_vm0, %v717_v9  ;;  %750 = vmatpush3.bf16.msra.mxu0 (!%p714_p4), %v819_v8  ;;  %286 = vst.msk [vmem:[#allocation2 + $0x8] sm:$0xff] (!%p714_p4), %vm284_vm1, %v821_v13  ;;  %285 = vst.msk [vmem:[#allocation2] sm:$0xff] (!%p714_p4), %vm284_vm1, %v822_v14 }
  0x13   : > { %751 = vmatprep.subr.bf16.mxu0 (!%p714_p4), %v820_v10  ;;  %817 = vset.pattern.permute.xlu0 (!%p714_p4), %v881_v11 }
  0x14   : > { %381 = vperm.xlu1 (!%p714_p4), %818, %v974_v6   ;;  %371 = vperm.xlu0 (!%p714_p4), %817, %v964_v4  }
  0x16   : > { %752 = vmatpush3.bf16.msra.mxu0 (!%p714_p4), %v820_v10 }
  0x18   : > { %386 = vperm.xlu1 %818, %v979_v7   ;;  %376 = vperm.xlu0 %817, %v969_v5  }
  0x19   : > { %754 = vmatmul.mubr.msk.bf16.vlgmr.msra.gmra.mrb[0].mxu0 %vm313_vm0, %v718_v12 }
  0x93   : > { %v382_v15 = vpop.permute.xlu1 %381  ;;  %v372_v16 = vpop.permute.xlu0 %371 }
  0x97   : > { %v387_v19 = vpop.permute.xlu1 %386  ;;  %v377_v21 = vpop.permute.xlu0 %376 }
  0xec   : > { %v755_v17 = vpop.f32.mrb[0].mxu0 }
  0xed   : > { %v354_v18 = vpop.f32.mrb[1].mxu0  ;;  %v391_v22 = vmul.f32 %v755_v17, %v382_v15 }
  0xee   : > { %v756_v20 = vpop.f32.mrb[2].mxu0  ;;  %v389_v25 = vmul.f32 %v372_v16, %v354_v18 }
  0xef   : > { %v392_v23 = vmul.f32 %v756_v20, %v387_v19  ;;  %v357_v24 = vpop.f32.mrb[3].mxu0 }
  0xf0   : > { %v390_v26 = vmul.f32 %v377_v21, %v357_v24 }
  0xf1   : > { %v394_v27 = vpack.c.bf16 %v392_v23, %v391_v22 }
  0xf2   : > { %v393_v28 = vpack.c.bf16 %v390_v26, %v389_v25 }
  0xf3   : > { %399 = vrot.lane.b32.xlu1 %v394_v27, %s882_s29 }
  0xf4   : > { %397 = vrot.lane.b32.xlu0 %v393_v28, %s882_s29 }
 0x165   : > { %v400_v29 = vpop.permute.xlu1 %399 }
 0x166   : > { %405 = vst.msk [vmem:[#allocation2 + $0x8] sm:$0xff] %vm403_vm2, %v400_v29  ;;  %v398_v30 = vpop.permute.xlu0 %397 }
 0x167   : > { %404 = vst.msk [vmem:[#allocation2] sm:$0xff] %vm403_vm2, %v398_v30 }
 0x168 PF: > { %p723_p5 = scmp.ne.s32.totalorder %s871_s18, 1 }
 0x169   : > { %v724_v32 = vcombine.low (!%p723_p5), %v944_v0, %v949_v1  ;;  %vm430_vm3 = vcmask (!%p723_p5), 261120   ;;  %s883_s30 = smov (!%p723_p5), 120   ;;  %v884_v33 = vmov (!%p723_p5), 0   ;;  %v725_v37 = vcombine.low (!%p723_p5), %v954_v2, %v959_v3  ;;  %v825_v39 = vld [vmem:[%s1065_s3] sm:$0xff] (!%p723_p5)   ;;  %v826_v40 = vld [vmem:[%s1065_s3 + $0x8] ss:$0 sps:$4 sm:$0xff] (!%p723_p5)  }
 0x16a   : > { %409 = sbr.rel (%p723_p5) target bundleno = 1051 (0x41b), region = 48  ;;  %823 = vset.pattern.permute.xlu1 (!%p723_p5), %v884_v33  ;;  %824 = vset.pattern.permute.xlu0 (!%p723_p5), %v884_v33  ;;  %vm555_vm4 = vcmask (!%p723_p5), 1043456   ;;  %s885_s9 = smov (!%p723_p5), 16   ;;  %vm524_vm5 = vcmask (!%p723_p5), 195712   ;;  %vm548_vm6 = vcmask (!%p723_p5), 195584  }
 0x16b   : > { %761 = vmatprep.mubr.msk.bf16.mxu0 (!%p723_p5), %vm430_vm3, %v724_v32  ;;  %488 = vperm.xlu1 (!%p723_p5), %823, %v964_v4   ;;  %v557_v42 = vsel (!%p723_p5), %vm555_vm4, %v826_v40, 0  ;;  %v728_v59 = vld [vmem:[%s1066_s4] ss:$0 sm:$0xff] (!%p723_p5) }
 0x16c   : > { %765 = vmatprep.subr.bf16.mxu1 (!%p723_p5), %v825_v39 }
 0x16d   : > { %v411_v34 = vld [vmem:[#allocation2 + $0x8] sm:$0xff] (!%p723_p5)  ;;  %766 = vmatpush3.bf16.msra.mxu1 (!%p723_p5), %v825_v39 }
 0x16e   : > { %v410_v31 = vld [vmem:[#allocation2] sm:$0xff] (!%p723_p5)  ;;  %773 = vmatprep.subr.msk.bf16.mxu1 (!%p723_p5), %vm555_vm4, %v826_v40 }
 0x16f   : > { %424 = vrot.lane.b32.xlu0 (!%p723_p5), %v410_v31, %s883_s30  ;;  %493 = vperm.xlu1 (!%p723_p5), %823, %v969_v5  }
 0x171   : > { %768 = vmatpush3.bf16.msra.mxu1 %v557_v42 }
 0x173   : > { %426 = vrot.lane.b32.xlu0 %v411_v34, %s883_s30  ;;  %503 = vperm.xlu1 %823, %v979_v7  }
 0x177   : > { %498 = vperm.xlu0 %824, %v974_v6  }
 0x1e1   : > { %v425_v35 = vpop.permute.xlu0 %424 }
 0x1e2   : > { %757 = vmatprep.subr.bf16.mxu0 %v425_v35 }
 0x1e3   : > { %758 = vmatpush3.bf16.msra.mxu0 %v425_v35 }
 0x1e5   : > { %v427_v36 = vpop.permute.xlu0 %426 }
 0x1e6   : > { %759 = vmatprep.subr.bf16.mxu0 %v427_v36 }
 0x1e7   : > { %760 = vmatpush3.bf16.msra.mxu0 %v427_v36 }
 0x1ea   : > { %762 = vmatmul.mubr.msk.bf16.vlgmr.msra.gmra.mrb[0].mxu0 %vm430_vm3, %v725_v37  ;;  %v489_v38 = vpop.permute.xlu1 %488 }
 0x1ee   : > { %v494_v41 = vpop.permute.xlu1 %493 }
 0x1f2   : > { %v504_v46 = vpop.permute.xlu1 %503 }
 0x1f6   : > { %v499_v44 = vpop.permute.xlu0 %498 }
 0x2bd   : > { %v763_v43 = vpop.f32.mrb[0].mxu0 }
 0x2be   : > { %v471_v45 = vpop.f32.mrb[1].mxu0  ;;  %v508_v48 = vmul.f32 %v763_v43, %v499_v44 }
 0x2bf   : > { %v764_v47 = vpop.f32.mrb[2].mxu0  ;;  %v506_v51 = vmul.f32 %v489_v38, %v471_v45 }
 0x2c0   : > { %v509_v49 = vmul.f32 %v764_v47, %v504_v46  ;;  %v474_v50 = vpop.f32.mrb[3].mxu0 }
 0x2c1   : > { %v507_v52 = vmul.f32 %v494_v41, %v474_v50 }
 0x2c2   : > { %v511_v53 = vpack.c.bf16 %v509_v49, %v508_v48 }
 0x2c3   : > { %v510_v54 = vpack.c.bf16 %v507_v52, %v506_v51 }
 0x2c4   : > { %516 = vrot.lane.b32.xlu0 %v511_v53, %s885_s9 }
 0x2c5   : > { %514 = vrot.lane.b32.xlu1 %v510_v54, %s885_s9 }
 0x336   : > { %v517_v55 = vpop.permute.xlu0 %516 }
 0x337   : > { %526 = vst.msk [vmem:[#allocation2 + $0x8] sm:$0xff] %vm524_vm5, %v517_v55  ;;  %v515_v56 = vpop.permute.xlu1 %514 }
 0x338   : > { %525 = vst.msk [vmem:[#allocation2] sm:$0xff] %vm524_vm5, %v515_v56 }
 0x33e   : > { %v528_v58 = vld [vmem:[#allocation2 + $0x8] sm:$0xff] }
 0x33f   : > { %v527_v57 = vld [vmem:[#allocation2] sm:$0xff] }
 0x340   : > { %769 = vmatprep.mubr.msk.bf16.mxu1 %vm548_vm6, %v527_v57 }
 0x341   : > { %770 = vmatmul.mubr.msk.bf16.vlgmr.msra.gmra.mrb[0].mxu1 %vm548_vm6, %v528_v58 }
 0x414   : > { %v771_v60 = vpop.f32.mrb[0].mxu1 }
 0x415   : > { %v602_v61 = vadd.f32 %v771_v60, %v728_v59  ;;  %v593_v62 = vpop.f32.mrb[1].mxu1 }
 0x416   : > { %v594_v63 = vadd.f32 %v728_v59, %v593_v62  ;;  %v772_v0 = vpop.f32.mrb[2].mxu1 }
 0x417   : > { %610 = vst.msk [vmem:[#allocation3 + $0x10] sm:$0xff] %vm430_vm3, %v602_v61  ;;  %v605_v1 = vadd.f32 %v772_v0, %v728_v59  ;;  %v596_v2 = vpop.f32.mrb[3].mxu1 }
 0x418   : > { %608 = vst.msk [vmem:[#allocation3] sm:$0xff] %vm430_vm3, %v594_v63  ;;  %v597_v3 = vadd.f32 %v728_v59, %v596_v2 }
 0x419   : > { %611 = vst.msk [vmem:[#allocation3 + $0x18] sm:$0xff] %vm430_vm3, %v605_v1 }
 0x41a   : > { %609 = vst.msk [vmem:[#allocation3 + $0x8] sm:$0xff] %vm430_vm3, %v597_v3 }
 0x41b PF: > { %p1028_p6 = scmp.eq.s32.totalorder %s709_s21, 1  ;;  %s886_s13 = smov [#allocation3]  }
 0x41c   : > { %s628_s14 = sshll.u32 %s886_s13, 4  ;;  %s629_s14 = int_to_ptr.vmem [resolvable:$true] %s628_s14 }
 0x41d   : > { %s827_s15 = scalar_lea.vmem %s629_s14, 512  ;;  %s833_s16 = scalar_lea.vmem %s629_s14, 1024 }
 0x41e   : > { %p828_p7 = scmp.ne.s32.totalorder %s629_s14, %s827_s15  ;;  %p834_p10 = scmp.lt.s32.totalorder %s629_s14, %s629_s14 }
 0x41f   : > { %p835_p11 = scmp.lt.s32.totalorder %s833_s16, %s827_s15 }
 0x420   : > { %p829_p8 = pnand %p828_p7, %p1028_p6 }
 0x421   : > { %p836_p12 = por %p835_p11, %p834_p10 }
 0x422   : > { %p830_p9 = pneg %p829_p8 }
 0x424   : > { %p837_p13 = pnand %p836_p12, %p830_p9 }
 0x426   : > { %840 = shalt.err (!%p837_p13)
}
 0x427   : > { %s841_s24 = scalar_lea.hbm %s1067_s5, 512 }
 0x428   : > { %p842_p0 = scmp.ne.s32.totalorder %s1067_s5, %s841_s24  ;;  %p847_p3 = scmp.lt.u32.totalorder %s841_s24, %s1067_s5 }
 0x42a   : > { %p843_p1 = pnand %p842_p0, %p1028_p6 }
 0x42c   : > { %p844_p2 = pneg %p843_p1 }
 0x42e   : > { %p849_p4 = pnand %p847_p3, %p844_p2 }
 0x430   : > { %852 = shalt.err (!%p849_p4)
}
 0x431   : > { %s887_s29 = smov 128   ;;  %s888_s30 = smov 8  }
 0x432   : > { %775 = dma.vmem_to_hbm [thread:$0]  (%p1028_p6), %s629_s14, 512, %s1067_s5, [#allocation4], %s887_s29, %s887_s29, %s888_s30  }
 0x433 PF: > { %p783_p5 = scmp.ge.s32.totalorder %s879_s20, 2  ;;  %p784_p7 = scmp.eq.s32.totalorder %s710_s22, 1 }
 0x435   : > { %p779_p8 = pnand %p784_p7, %p783_p5 }
 0x437   : > { %866 = dma.done.wait (!%p779_p8), [#allocation4], 512  }
 0x438   : > { %868 = vsyncadd (!%p779_p8), [#allocation4], 4294966784  ;;  %s18_s20 = sadd.s32 1, %s879_s20   ;;  %s1069_s18 = smov %s875_s19 }
 0x439   : > { %p15_p9 = scmp.ge.s32.totalorder %s18_s20, 4   ;;  %s1070_s19 = smov %s1072_s23 }
 0x43b   :  { %17 = sbr.rel (!%p15_p9) target bundleno = 3 (0x3), region = 87 }
 0x442   :  { %649 = vsyncpa [#allocation4], 1 }
 0x443   :  { %651 = vsyncpa [#allocation4 + $0x1], 1 }

</bundles_post_ra>
